<compile_context>
chip_gen: v7x
topology: tpu7x:2x2x1
jax: 0.10.0
libtpu: 0.0.40
codegen_flags: <defaults>
</compile_context>

<pallas_src>
import functools

import jax
import jax.numpy as jnp
from jax import lax
from jax.experimental import pallas as pl
from jax.experimental.pallas import tpu as pltpu


# --------------------------------------------------------------------------- #
# Kernel
# --------------------------------------------------------------------------- #
def _make_rfm_kernel(tb, n, rc):
    """Kernel for one (tb, n) batch tile, processed in rc-row sub-chunks."""
    assert tb % rc == 0
    n_chunks = tb // rc

    def kernel(x_ref, w1_ref, b1_ref, w2_ref, b2_ref, o_ref):
        # Hoist the resident operands and the bias broadcasts out of the loop.
        w1 = w1_ref[...]
        w2 = w2_ref[...]
        b1 = jnp.broadcast_to(b1_ref[...], (rc, n))
        b2 = jnp.broadcast_to(b2_ref[...], (rc, n))

        def compute(row0):
            # In-kernel cast to the MXU dtype (free VPU filler under the matmul).
            x = x_ref[pl.ds(row0, rc), :].astype(w1.dtype)
            h = jnp.dot(x, w1, preferred_element_type=jnp.float32)
            h = jnp.maximum(h + b1, 0.0).astype(w2.dtype)
            y = jnp.dot(h, w2, preferred_element_type=jnp.float32)
            y = jnp.maximum(y + b2, 0.0)
            o_ref[pl.ds(row0, rc), :] = y.astype(o_ref.dtype)

        if n_chunks == 1:
            compute(0)
        else:
            def body(c, carry):
                compute(pl.multiple_of(c * rc, rc))
                return carry
            lax.fori_loop(0, n_chunks, body, 0, unroll=True)

    return kernel


# --------------------------------------------------------------------------- #
# Helpers
# --------------------------------------------------------------------------- #
@functools.lru_cache(maxsize=1)
def _single_buffer_supported():
    """Probe (once, in isolation) whether pipeline_mode=pl.Buffered(1) works on
    a constant-index operand.  The probe is its own tiny compile, so a failure
    here can never mask a compile error of the real RFM pallas_call."""
    try:
        with jax.ensure_compile_time_eval():
            kw = dict(pipeline_mode=pl.Buffered(buffer_count=1))

            def k(x_ref, w_ref, o_ref):
                o_ref[...] = x_ref[...] + w_ref[...]

            f = pl.pallas_call(
                k,
                out_shape=jax.ShapeDtypeStruct((16, 128), jnp.float32),
                grid_spec=pltpu.PrefetchScalarGridSpec(
                    num_scalar_prefetch=0,
                    grid=(2,),
                    in_specs=[pl.BlockSpec((8, 128), lambda i: (i, 0)),
                              pl.BlockSpec((8, 128), lambda i: (0, 0), **kw)],
                    out_specs=pl.BlockSpec((8, 128), lambda i: (i, 0))))
            out = f(jnp.ones((16, 128), jnp.float32),
                    jnp.full((8, 128), 2.0, jnp.float32))
            return bool(jnp.allclose(out, 3.0))
    except Exception:  # probe only -- the real pallas_call is never retried
        return False


def _vmem_limit_bytes(n, tb, rc, x_isz, w_isz, o_isz, w_bufs):
    """Compute a scoped-VMEM request from the actual footprint, capped below
    physical VMEM of the current chip (v7x: 64 MiB, v5e/v6e: 128 MiB)."""
    weights = 2 * n * n * w_isz * w_bufs          # W1, W2 resident in VMEM
    biases = 2 * n * 4 * 2                        # b1, b2 (default-buffered)
    x_tiles = 2 * tb * n * x_isz                  # double-buffered input tile
    o_tiles = 2 * tb * n * o_isz                  # double-buffered output tile
    interm = 4 * rc * n * 4                       # f32 h/y chunks + bias bcasts
    required = weights + biases + x_tiles + o_tiles + interm + (4 << 20)

    try:
        cap = pltpu.get_tpu_info().vmem_capacity_bytes
    except Exception:
        cap = 64 << 20                            # v7x-safe fallback
    limit = min(max(required, 32 << 20), cap - (cap >> 3))
    if required > limit:
        # TODO(synk): add a K/N-tiled weight path (second "arbitrary" grid axis
        # with a pl.when-gated accumulator) for n too large for residency.
        raise ValueError(
            f"RFM Pallas kernel needs ~{required >> 20} MiB VMEM (n={n}, "
            f"tb={tb}) but only ~{limit >> 20} MiB is available; reduce n_in "
            f"or the batch tile.")
    return int(limit)


def _choose_batch_tiling(B, tb=None):
    """Return (padded batch Bp, batch tile tb)."""
    if tb is not None:
        tb = max(8, (int(tb) // 8) * 8)
        return ((B + tb - 1) // tb) * tb, tb
    if B <= 128:
        Bp = max(8, ((B + 7) // 8) * 8)           # single tile, <=7 pad rows
        return Bp, Bp
    Bp = ((B + 127) // 128) * 128                 # <=127 pad rows
    half = ((Bp // 2 + 127) // 128) * 128         # keep >=2 steps (v7x: 2 TCs)
    tb = 128
    for cand in (1024, 512, 256):
        if Bp % cand == 0 and cand <= half:
            tb = cand
            break
    return Bp, tb


# --------------------------------------------------------------------------- #
# Public API
# --------------------------------------------------------------------------- #
def prepare_rfm_params(w1, b1, w2, b2, *, compute_dtype=jnp.bfloat16):
    """Pad the feature axis to a multiple of 128 lanes and cast the weights to
    the MXU compute dtype ONCE (hoisted out of the per-call path).  Weights are
    stored as (in, out) == W.T so the kernel computes x @ W.T + b, matching
    torch.nn.Linear.  Use compute_dtype=jnp.float32 for strict parity."""
    n_in = w1.shape[0]
    assert w1.shape == (n_in, n_in) and w2.shape == (n_in, n_in)
    assert b1.shape == (n_in,) and b2.shape == (n_in,)
    pad = (-n_in) % 128
    n = n_in + pad
    if pad:
        w1 = jnp.pad(w1, ((0, pad), (0, pad)))
        w2 = jnp.pad(w2, ((0, pad), (0, pad)))
        b1 = jnp.pad(b1, ((0, pad),))
        b2 = jnp.pad(b2, ((0, pad),))
    return {
        "w1": w1.astype(compute_dtype),
        "w2": w2.astype(compute_dtype),
        "b1": b1.reshape(1, n).astype(jnp.float32),
        "b2": b2.reshape(1, n).astype(jnp.float32),
    }


def rfm_forward(x, params, *, out_dtype=None, tb=None):
    """x: (B, n_in).  params: output of prepare_rfm_params.
    Returns ReLU(ReLU(x @ W1.T + b1) @ W2.T + b2), shape (B, n_in)."""
    B, n_in = x.shape
    n = params["w1"].shape[0]
    if params["w1"].shape != (n, n) or n_in > n:
        raise ValueError("params do not match x; rebuild with prepare_rfm_params")
    out_dtype = x.dtype if out_dtype is None else jnp.dtype(out_dtype)

    Bp, tb = _choose_batch_tiling(B, tb)
    if Bp != B or n != n_in:
        x = jnp.pad(x, ((0, Bp - B), (0, n - n_in)))

    rc = tb if tb <= 256 else 256                 # sub-chunk rows in the kernel
    if _single_buffer_supported():
        w_kw, w_bufs = dict(pipeline_mode=pl.Buffered(buffer_count=1)), 1
    else:
        w_kw, w_bufs = {}, 2

    x_isz = jnp.dtype(x.dtype).itemsize
    w_isz = jnp.dtype(params["w1"].dtype).itemsize
    o_isz = jnp.dtype(out_dtype).itemsize
    vmem_limit = _vmem_limit_bytes(n, tb, rc, x_isz, w_isz, o_isz, w_bufs)

    grid_spec = pltpu.PrefetchScalarGridSpec(
        num_scalar_prefetch=0,
        grid=(Bp // tb,),
        in_specs=[
            pl.BlockSpec((tb, n), lambda i: (i, 0)),           # x tile (streamed)
            pl.BlockSpec((n, n), lambda i: (0, 0), **w_kw),    # W1 (resident)
            pl.BlockSpec((1, n), lambda i: (0, 0)),            # b1
            pl.BlockSpec((n, n), lambda i: (0, 0), **w_kw),    # W2 (resident)
            pl.BlockSpec((1, n), lambda i: (0, 0)),            # b2
        ],
        out_specs=pl.BlockSpec((tb, n), lambda i: (i, 0)),
    )

    out = pl.pallas_call(
        _make_rfm_kernel(tb, n, rc),
        out_shape=jax.ShapeDtypeStruct((Bp, n), out_dtype),
        grid_spec=grid_spec,
        compiler_params=pltpu.CompilerParams(
            dimension_semantics=("parallel",),
            vmem_limit_bytes=vmem_limit,
        ),
        cost_estimate=pl.CostEstimate(
            flops=4 * Bp * n * n,                        # two (Bp,n)x(n,n) GEMMs
            transcendentals=0,
            bytes_accessed=(Bp * n * (x_isz + o_isz)
                            + 2 * n * n * w_isz + 2 * n * 4),
        ),
    )(x, params["w1"], params["b1"], params["w2"], params["b2"])

    return out[:B, :n_in]


def init_rfm_params(key, n_in, dtype=jnp.float32):
    """torch.nn.Linear default init: U(-1/sqrt(fan_in), 1/sqrt(fan_in)).
    Weights are produced directly as (in, out) == W.T."""
    k1, k2, k3, k4 = jax.random.split(key, 4)
    bound = 1.0 / (n_in ** 0.5)
    w1 = jax.random.uniform(k1, (n_in, n_in), dtype, -bound, bound)
    b1 = jax.random.uniform(k2, (n_in,), dtype, -bound, bound)
    w2 = jax.random.uniform(k3, (n_in, n_in), dtype, -bound, bound)
    b2 = jax.random.uniform(k4, (n_in,), dtype, -bound, bound)
    return w1, b1, w2, b2


def rfm_reference(x, w1, b1, w2, b2):
    h = jnp.maximum(x @ w1 + b1, 0.0)
    return jnp.maximum(h @ w2 + b2, 0.0)


# --------------------------------------------------------------------------- #
# Self-test
# --------------------------------------------------------------------------- #
if __name__ == "__main__":
    key = jax.random.PRNGKey(0)
    kx1, kp1, kx2, kp2, kx3 = jax.random.split(key, 5)

    # Warm the single-buffer probe once, outside any jit trace.
    _single_buffer_supported()

    fwd = jax.jit(rfm_forward)

    # 1) Aligned small shape: B=16, n_in=128 -> one grid step, bf16 MXU.
    B, n_in = 16, 128
    x = jax.random.normal(kx1, (B, n_in), dtype=jnp.float32)
    raw1 = init_rfm_params(kp1, n_in)
    p1 = prepare_rfm_params(*raw1)                         # bf16 compute
    out = jax.block_until_ready(fwd(x, p1))
    ref = rfm_reference(x, *raw1)
    assert out.shape == (B, n_in) and out.dtype == x.dtype
    assert jnp.allclose(out, ref, atol=5e-2, rtol=5e-2), "mismatch (bf16 aligned)"

    # 1b) float32 compute path for tighter parity with the PyTorch module.
    p1_f32 = prepare_rfm_params(*raw1, compute_dtype=jnp.float32)
    out_f32 = jax.block_until_ready(fwd(x, p1_f32))
    assert jnp.allclose(out_f32, ref, atol=1e-2, rtol=1e-2), "mismatch (f32)"

    # 2) Unaligned shape: B=10, n_in=100 -> lane (100->128) and batch (10->16)
    #    zero-padding, sliced off in the wrapper.
    B2, n2 = 10, 100
    x2 = jax.random.normal(kx2, (B2, n2), dtype=jnp.float32)
    raw2 = init_rfm_params(kp2, n2)
    p2 = prepare_rfm_params(*raw2)
    out2 = jax.block_until_ready(fwd(x2, p2))
    ref2 = rfm_reference(x2, *raw2)
    assert out2.shape == (B2, n2)
    assert jnp.allclose(out2, ref2, atol=5e-2, rtol=5e-2), "mismatch (padded)"

    # 3) Larger batch: B=1024 -> 2 grid steps of tb=512 (both v7x TCs usable),
    #    chunked kernel body, bf16 output (halved HBM write traffic).
    B3 = 1024
    x3 = jax.random.normal(kx3, (B3, n_in), dtype=jnp.float32)
    fwd_bf16 = jax.jit(functools.partial(rfm_forward, out_dtype=jnp.bfloat16))
    out3 = jax.block_until_ready(fwd_bf16(x3, p1))
    ref3 = rfm_reference(x3, *raw1)
    assert out3.shape == (B3, n_in) and out3.dtype == jnp.bfloat16
    assert jnp.allclose(out3.astype(jnp.float32), ref3, atol=1e-1, rtol=1e-1), \
        "mismatch (large batch)"

    print("KERNEL_OK")
</pallas_src>

<mosaic_0001>
module attributes {stable_mosaic.version = 11 : i64} {
  func.func @k(%arg0: i32, %arg1: memref<8x128xf32, #tpu.memory_space<vmem>>, %arg2: memref<8x128xf32, #tpu.memory_space<vmem>>, %arg3: memref<8x128xf32, #tpu.memory_space<vmem>>) attributes {dimension_semantics = [#tpu.dimension_semantics<arbitrary>], iteration_bounds = array<i64: 2>, scalar_prefetch = 0 : i64, scratch_operands = 0 : i64, tpu.core_type = #tpu.core_type<tc>, window_params = [{transform_indices = @transform_0, window_bounds = array<i64: 8, 128>}, {pipeline_mode = #tpu.pipeline_mode<synchronous>, transform_indices = @transform_1, window_bounds = array<i64: 8, 128>}, {transform_indices = @transform_2, window_bounds = array<i64: 8, 128>}]} {
    %c0 = arith.constant 0 : index
    %c0_0 = arith.constant 0 : index
    %0 = vector.load %arg1[%c0, %c0_0] : memref<8x128xf32, #tpu.memory_space<vmem>>, vector<8x128xf32>
    %c0_1 = arith.constant 0 : index
    %c0_2 = arith.constant 0 : index
    %1 = vector.load %arg2[%c0_1, %c0_2] : memref<8x128xf32, #tpu.memory_space<vmem>>, vector<8x128xf32>
    %2 = arith.addf %0, %1 : vector<8x128xf32>
    %c0_3 = arith.constant 0 : index
    %c0_4 = arith.constant 0 : index
    %3 = vector.load %arg3[%c0_3, %c0_4] : memref<8x128xf32, #tpu.memory_space<vmem>>, vector<8x128xf32>
    tpu.vector_store %arg3[%c0_3, %c0_4], %2 {strides = array<i32>} : memref<8x128xf32, #tpu.memory_space<vmem>>, vector<8x128xf32>,
    return
  }
  func.func @transform_0(%arg0: i32) -> (i32, i32) {
    %c0_i32 = arith.constant 0 : i32
    %c0_i32_0 = arith.constant 0 : i32
    return %arg0, %c0_i32 : i32, i32
  }
  func.func @transform_1(%arg0: i32) -> (i32, i32) {
    %c0_i32 = arith.constant 0 : i32
    %c0_i32_0 = arith.constant 0 : i32
    %c0_i32_1 = arith.constant 0 : i32
    return %c0_i32, %c0_i32_0 : i32, i32
  }
  func.func @transform_2(%arg0: i32) -> (i32, i32) {
    %c0_i32 = arith.constant 0 : i32
    %c0_i32_0 = arith.constant 0 : i32
    return %arg0, %c0_i32 : i32, i32
  }
}

module attributes {stable_mosaic.version = 11 : i64} {
  func.func @kernel(%arg0: i32, %arg1: memref<16x128xf32, #tpu.memory_space<vmem>>, %arg2: memref<128x128xbf16, #tpu.memory_space<vmem>>, %arg3: memref<1x128xf32, #tpu.memory_space<vmem>>, %arg4: memref<128x128xbf16, #tpu.memory_space<vmem>>, %arg5: memref<1x128xf32, #tpu.memory_space<vmem>>, %arg6: memref<16x128xf32, #tpu.memory_space<vmem>>) attributes {dimension_semantics = [#tpu.dimension_semantics<parallel>], iteration_bounds = array<i64: 1>, scalar_prefetch = 0 : i64, scratch_operands = 0 : i64, tpu.core_type = #tpu.core_type<tc>, window_params = [{transform_indices = @transform_0, window_bounds = array<i64: 16, 128>}, {pipeline_mode = #tpu.pipeline_mode<synchronous>, transform_indices = @transform_1, window_bounds = array<i64: 128, 128>}, {pipeline_mode = #tpu.pipeline_mode<synchronous>, transform_indices = @transform_2, window_bounds = array<i64: 1, 128>}, {pipeline_mode = #tpu.pipeline_mode<synchronous>, transform_indices = @transform_3, window_bounds = array<i64: 128, 128>}, {pipeline_mode = #tpu.pipeline_mode<synchronous>, transform_indices = @transform_4, window_bounds = array<i64: 1, 128>}, {transform_indices = @transform_5, window_bounds = array<i64: 16, 128>}]} {
    %c0 = arith.constant 0 : index
    %c0_0 = arith.constant 0 : index
    %0 = vector.load %arg2[%c0, %c0_0] : memref<128x128xbf16, #tpu.memory_space<vmem>>, vector<128x128xbf16>
    %c0_1 = arith.constant 0 : index
    %c0_2 = arith.constant 0 : index
    %1 = vector.load %arg4[%c0_1, %c0_2] : memref<128x128xbf16, #tpu.memory_space<vmem>>, vector<128x128xbf16>
    %c0_3 = arith.constant 0 : index
    %c0_4 = arith.constant 0 : index
    %2 = vector.load %arg3[%c0_3, %c0_4] : memref<1x128xf32, #tpu.memory_space<vmem>>, vector<1x128xf32>
    %3 = vector.shape_cast %2 : vector<1x128xf32> to vector<1x128xf32>
    %4 = vector.broadcast %3 : vector<1x128xf32> to vector<16x128xf32>
    %c0_5 = arith.constant 0 : index
    %c0_6 = arith.constant 0 : index
    %5 = vector.load %arg5[%c0_5, %c0_6] : memref<1x128xf32, #tpu.memory_space<vmem>>, vector<1x128xf32>
    %6 = vector.shape_cast %5 : vector<1x128xf32> to vector<1x128xf32>
    %7 = vector.broadcast %6 : vector<1x128xf32> to vector<16x128xf32>
    %c0_7 = arith.constant 0 : index
    %c0_8 = arith.constant 0 : index
    %8 = vector.load %arg1[%c0_7, %c0_8] : memref<16x128xf32, #tpu.memory_space<vmem>>, vector<16x128xf32>
    %9 = arith.truncf %8 : vector<16x128xf32> to vector<16x128xbf16>
    %cst = arith.constant dense<0.000000e+00> : vector<16x128xf32>
    %10 = tpu.matmul %9, %0, %cst {dimension_numbers = #tpu.dot_dimension_numbers<[1], [0], [0], [1], [0, 0, 1, 1], [], []>} : vector<16x128xbf16>, vector<128x128xbf16>, vector<16x128xf32> -> vector<16x128xf32>
    %11 = arith.addf %10, %4 : vector<16x128xf32>
    %cst_9 = arith.constant 0.000000e+00 : f32
    %12 = vector.broadcast %cst_9 : f32 to vector<16x128xf32>
    %13 = arith.maximumf %11, %12 : vector<16x128xf32>
    %14 = arith.truncf %13 : vector<16x128xf32> to vector<16x128xbf16>
    %cst_10 = arith.constant dense<0.000000e+00> : vector<16x128xf32>
    %15 = tpu.matmul %14, %1, %cst_10 {dimension_numbers = #tpu.dot_dimension_numbers<[1], [0], [0], [1], [0, 0, 1, 1], [], []>} : vector<16x128xbf16>, vector<128x128xbf16>, vector<16x128xf32> -> vector<16x128xf32>
    %16 = arith.addf %15, %7 : vector<16x128xf32>
    %cst_11 = arith.constant 0.000000e+00 : f32
    %17 = vector.broadcast %cst_11 : f32 to vector<16x128xf32>
    %18 = arith.maximumf %16, %17 : vector<16x128xf32>
    %c0_12 = arith.constant 0 : index
    %c0_13 = arith.constant 0 : index
    %19 = vector.load %arg6[%c0_12, %c0_13] : memref<16x128xf32, #tpu.memory_space<vmem>>, vector<16x128xf32>
    tpu.vector_store %arg6[%c0_12, %c0_13], %18 {strides = array<i32>} : memref<16x128xf32, #tpu.memory_space<vmem>>, vector<16x128xf32>,
    return
  }
  func.func @transform_0(%arg0: i32) -> (i32, i32) {
    %c0_i32 = arith.constant 0 : i32
    %c0_i32_0 = arith.constant 0 : i32
    return %arg0, %c0_i32 : i32, i32
  }
  func.func @transform_1(%arg0: i32) -> (i32, i32) {
    %c0_i32 = arith.constant 0 : i32
    %c0_i32_0 = arith.constant 0 : i32
    %c0_i32_1 = arith.constant 0 : i32
    return %c0_i32, %c0_i32_0 : i32, i32
  }
  func.func @transform_2(%arg0: i32) -> (i32, i32) {
    %c0_i32 = arith.constant 0 : i32
    %c0_i32_0 = arith.constant 0 : i32
    %c0_i32_1 = arith.constant 0 : i32
    return %c0_i32, %c0_i32_0 : i32, i32
  }
  func.func @transform_3(%arg0: i32) -> (i32, i32) {
    %c0_i32 = arith.constant 0 : i32
    %c0_i32_0 = arith.constant 0 : i32
    %c0_i32_1 = arith.constant 0 : i32
    return %c0_i32, %c0_i32_0 : i32, i32
  }
  func.func @transform_4(%arg0: i32) -> (i32, i32) {
    %c0_i32 = arith.constant 0 : i32
    %c0_i32_0 = arith.constant 0 : i32
    %c0_i32_1 = arith.constant 0 : i32
    return %c0_i32, %c0_i32_0 : i32, i32
  }
  func.func @transform_5(%arg0: i32) -> (i32, i32) {
    %c0_i32 = arith.constant 0 : i32
    %c0_i32_0 = arith.constant 0 : i32
    return %arg0, %c0_i32 : i32, i32
  }
}

</mosaic_0001>

<bundles_post_ra>
// kernel: tpu_custom_call.1
= control target key start
LH: loop header
LB: loop body
LE: loop exit
PB: predicated region body
PF: predicated region fallthrough
CT: control target
= control target key end

     0   :  { %7 = vsyncpa [#allocation3], 0  ;;  %s690_s0 = inlined_call_operand.hbm [shape: f32[16,128], index: 0, kind: input, shape index: {}]   ;;  %s691_s1 = inlined_call_operand.hbm [shape: f32[8,128], index: 1, kind: input, shape index: {}]   ;;  %s692_s2 = inlined_call_operand.hbm [shape: f32[16,128], index: 2, kind: output, shape index: {}]  }
   0x1   :  { %9 = vsyncpa [#allocation3 + $0x1], 0 }
   0x2   :  { %10 = vsyncpa [#allocation6], 0 }
   0x3   :  { %11 = vsyncpa [#allocation4], 0 }
   0x4   :  { %13 = vsyncpa [#allocation4 + $0x1], 0  ;;  %s489_s9 = smov 0   ;;  %s491_s10 = smov 0  }
   0x5   :  { %s493_s11 = smov 0   ;;  %s495_s12 = smov 0  }
   0x6 LB: > { %s510_s13 = sadd.s32 4294967295, %s469_s12   ;;  %s270_s14 = sadd.s32 4294967294, %s469_s12   ;;  %s469_s12 = sphi %s495_s12, %s716_s12   ;;  %s465_s11 = sphi %s493_s11, %s715_s11   ;;  %s461_s10 = sphi %s491_s10, %s714_s10   ;;  %s457_s9 = sphi %s489_s9, %s713_s9  }
   0x7   : > { %p39_p0 = scmp.ne.s32.totalorder %s461_s10, %s457_s9  ;;  %p693_p1 = scmp.eq.s32.totalorder %s510_s13, 0 }
   0x8   : > { %p90_p3 = scmp.eq.s32.totalorder %s270_s14, 1  ;;  %p271_p5 = scmp.ge.s32.totalorder %s469_s12, 1 }
   0x9   : > { %p519_p4 = por %p693_p1, %p39_p0  ;;  %p97_p7 = scmp.lt.s32.totalorder %s469_s12, 3 }
   0xa   : > { %p524_p6 = por %p90_p3, %p39_p0  ;;  %s471_s18 = smov [#allocation5]  }
   0xb   : > { %s696_s15 = scalar_select %p519_p4, 1, 0 }
   0xc   : > { %s697_s16 = scalar_select %p524_p6, 1, 0 }
   0xd   : > { %p529_p8 = pnand %p271_p5, %p97_p7  ;;  %s110_s19 = sshll.u32 %s471_s18, 4  ;;  %s111_s19 = int_to_ptr.vmem [resolvable:$true] %s110_s19 }
   0xe   : > { %s537_s20 = sadd.s32 1, %s469_s12   ;;  %s26_s24 = sadd.s32 1, %s465_s11 }
   0xf   : > { %s698_s17 = scalar_select %p529_p8, 1, 0 }
  0x10   : > { %p292_p10 = pneg %p529_p8  ;;  %s23_s22 = ssub.s32 %s469_s12, %s537_s20 }
  0x11   : > { %p547_p12 = scmp.eq.s32.totalorder %s23_s22, 0  ;;  %s341_s27 = scalar_lea.hbm %s691_s1, 128 }
  0x12   : > { %p541_p11 = pnand %p292_p10, %p693_p1  ;;  %p342_p0 = scmp.ne.s32.totalorder %s691_s1, %s341_s27 }
  0x13   : > { %s700_s23 = scalar_select %p547_p12, 1, 0 }
  0x14   : > { %p343_p3 = pneg %p541_p11  ;;  %p348_p10 = scmp.lt.u32.totalorder %s341_s27, %s691_s1 }
  0x16   : > { %p344_p5 = pnand %p343_p3, %p342_p0 }
  0x18   : > { %p345_p7 = pneg %p344_p5 }
  0x1a   : > { %p350_p9 = pnand %p348_p10, %p345_p7 }
  0x1c   : > { %353 = shalt.err (!%p350_p9)
}
  0x1d   : > { %s354_s4 = scalar_lea.vmem %s111_s19, 128  ;;  %p362_p6 = scmp.lt.s32.totalorder %s111_s19, %s111_s19 }
  0x1e   : > { %p355_p1 = scmp.ne.s32.totalorder %s111_s19, %s354_s4  ;;  %p363_p4 = scmp.lt.s32.totalorder %s354_s4, %s354_s4 }
  0x20   : > { %p357_p2 = pnand %p355_p1, %p343_p3  ;;  %p364_p8 = por %p363_p4, %p362_p6 }
  0x22   : > { %p358_p13 = pneg %p357_p2 }
  0x24   : > { %p365_p12 = pnand %p364_p8, %p358_p13 }
  0x26   : > { %368 = shalt.err (!%p365_p12)
}
  0x27   : > { %295 = dma.hbm_to_vmem [thread:$0]  (!%p541_p11), %s691_s1, 128, %s111_s19, [#allocation6]  }
  0x28   : > { %p701_p1 = scmp.ne.s32.totalorder %s700_s23, 0  ;;  %p34_p2 = scmp.eq.s32.totalorder %s469_s12, 0 }
  0x29   : > { %p702_p4 = scmp.ne.s32.totalorder %s465_s11, %s461_s10  ;;  %p703_p6 = scmp.eq.s32.totalorder %s510_s13, 1 }
  0x2a   : > { %s573_s7 = scalar_select %p701_p1, %s465_s11, %s26_s24  }
  0x2b   : > { %p581_p8 = por %p703_p6, %p702_p4  ;;  %p305_p9 = scmp.lt.s32.totalorder %s469_s12, 2 }
  0x2c   : > { %s121_s14 = sand.u32 1, %s465_s11   ;;  %p705_p12 = pmov %p702_p4 }
  0x2d   : > { %s274_s18 = sshll.u32 %s121_s14, 3  ;;  %s275_s21 = sshll.u32 %s469_s12, 7 }
  0x2e   : > { %p35_p13 = por %p34_p2, %p705_p12  ;;  %s594_s19 = scalar_lea.hbm %s690_s0, %s275_s21 }
  0x2f   : > { %s125_s23 = scalar_lea.vmem [#allocation2], %s274_s18  ;;  %s122_s27 = scalar_lea.sflag [#allocation3], %s121_s14 }
  0x30   : > { %s132_s24 = sshll.u32 %s125_s23, 4  ;;  %p596_p11 = pnand %p305_p9, %p35_p13  ;;  %s600_s24 = int_to_ptr.vmem [resolvable:$true] %s132_s24 }
  0x31   : > { %s369_s28 = scalar_lea.hbm %s594_s19, 128  ;;  %s374_s3 = scalar_lea.hbm %s690_s0, 256 }
  0x32   : > { %p370_p0 = scmp.ne.s32.totalorder %s594_s19, %s369_s28  ;;  %p371_p3 = pneg %p596_p11 }
  0x33   : > { %p375_p10 = scmp.lt.u32.totalorder %s594_s19, %s690_s0  ;;  %p376_p1 = scmp.lt.u32.totalorder %s374_s3, %s369_s28 }
  0x34   : > { %p372_p5 = pnand %p371_p3, %p370_p0  ;;  %p378_p4 = scmp.lt.u32.totalorder %s369_s28, %s594_s19 }
  0x35   : > { %p377_p2 = por %p376_p1, %p375_p10 }
  0x36   : > { %p373_p7 = pneg %p372_p5 }
  0x37   : > { %p379_p6 = por %p378_p4, %p377_p2 }
  0x39   : > { %p380_p9 = pnand %p379_p6, %p373_p7 }
  0x3b   : > { %383 = shalt.err (!%p380_p9)
}
  0x3c   : > { %s384_s6 = scalar_lea.vmem %s600_s24, 128  ;;  %s472_s14 = smov [#allocation2]  }
  0x3d   : > { %p385_p12 = scmp.ne.s32.totalorder %s600_s24, %s384_s6  ;;  %s389_s18 = sshll.u32 %s472_s14, 4  ;;  %s390_s18 = int_to_ptr.vmem [resolvable:$false] %s389_s18 }
  0x3e   : > { %s391_s21 = scalar_lea.vmem %s390_s18, 256  ;;  %p392_p5 = scmp.lt.s32.totalorder %s600_s24, %s390_s18 }
  0x3f   : > { %p387_p13 = pnand %p385_p12, %p371_p3  ;;  %p393_p10 = scmp.lt.s32.totalorder %s391_s21, %s384_s6 }
  0x41   : > { %p388_p0 = pneg %p387_p13  ;;  %p394_p1 = por %p393_p10, %p392_p5 }
  0x43   : > { %p395_p2 = pnand %p394_p1, %p388_p0 }
  0x45   : > { %398 = shalt.err (!%p395_p2)
}
  0x46   : > { %299 = dma.hbm_to_vmem [thread:$0]  (!%p596_p11), %s594_s19, 128, %s600_s24, %s122_s27  }
  0x47   : > { %p707_p7 = scmp.ne.s32.totalorder %s698_s17, 0 }
  0x48   : > { %s630_s22 = sand.u32 (!%p707_p7), 1, %s461_s10   ;;  %p708_p3 = scmp.ne.s32.totalorder (!%p707_p7), %s696_s15, 0 }
  0x49   : > { %141 = sbr.rel (%p707_p7) target bundleno = 109 (0x6d), region = 28  ;;  %s277_s25 = sshll.u32 (!%p707_p7), %s630_s22, 3 }
  0x4a   : > { %s144_s23 = scalar_lea.sflag (!%p707_p7), [#allocation3], %s630_s22  ;;  %s147_s28 = scalar_lea.vmem (!%p707_p7), [#allocation2], %s277_s25 }
  0x50   : > { %444 = dma.done.wait (%p708_p3), %s144_s23, 128  }
  0x51   : > { %446 = vsyncadd (%p708_p3), %s144_s23, 4294967168  ;;  %p709_p4 = scmp.eq.s32.totalorder %s510_s13, 0 }
  0x53   : > { %448 = dma.done.wait (%p709_p4), [#allocation6], 128   ;;  %p710_p11 = pmov %p709_p4 }
  0x54   : > { %s171_s17 = scalar_lea.vmem [#allocation7], %s277_s25  ;;  %s281_s24 = sshll.u32 %s510_s13, 7  ;;  %v172_v0 = vld [vmem:[%s147_s28] sm:$0xff]  ;;  %v173_v1 = vld [vmem:[#allocation5] sm:$0xff] }
  0x55   : > { %450 = vsyncadd (%p710_p11), [#allocation6], 4294967168  ;;  %s190_s19 = sshll.u32 %s171_s17, 4  ;;  %v174_v2 = vadd.f32 %v173_v1, %v172_v0  ;;  %s648_s27 = scalar_lea.hbm %s692_s2, %s281_s24  ;;  %s643_s19 = int_to_ptr.vmem [resolvable:$true] %s190_s19 }
  0x56   : > { %s177_s29 = scalar_lea.sflag [#allocation4], %s630_s22  ;;  %s399_s30 = scalar_lea.vmem %s643_s19, 128 }
  0x57   : > { %175 = vst [vmem:[%s171_s17] sm:$0xff] %v174_v2  ;;  %p400_p6 = scmp.ne.s32.totalorder %s643_s19, %s399_s30  ;;  %s473_s13 = smov [#allocation7]  }
  0x58   : > { %s403_s3 = sshll.u32 %s473_s13, 4  ;;  %s404_s3 = int_to_ptr.vmem [resolvable:$false] %s403_s3 }
  0x59   : > { %p401_p9 = pnand %p400_p6, %p581_p8  ;;  %s405_s4 = scalar_lea.vmem %s404_s3, 256 }
  0x5a   : > { %p406_p13 = scmp.lt.s32.totalorder %s643_s19, %s404_s3  ;;  %p407_p0 = scmp.lt.s32.totalorder %s405_s4, %s399_s30 }
  0x5b   : > { %p402_p12 = pneg %p401_p9 }
  0x5c   : > { %p408_p5 = por %p407_p0, %p406_p13 }
  0x5e   : > { %p409_p10 = pnand %p408_p5, %p402_p12 }
  0x60   : > { %412 = shalt.err (!%p409_p10)
}
  0x61   : > { %s413_s5 = scalar_lea.hbm %s648_s27, 128  ;;  %s417_s18 = scalar_lea.hbm %s692_s2, 256 }
  0x62   : > { %p414_p1 = scmp.ne.s32.totalorder %s648_s27, %s413_s5  ;;  %p418_p3 = scmp.lt.u32.totalorder %s648_s27, %s692_s2 }
  0x63   : > { %p419_p4 = scmp.lt.u32.totalorder %s417_s18, %s413_s5  ;;  %p421_p6 = scmp.lt.u32.totalorder %s413_s5, %s648_s27 }
  0x64   : > { %p415_p2 = pnand %p414_p1, %p581_p8 }
  0x65   : > { %p420_p11 = por %p419_p4, %p418_p3 }
  0x66   : > { %p416_p7 = pneg %p415_p2 }
  0x67   : > { %p422_p9 = por %p421_p6, %p420_p11 }
  0x69   : > { %p423_p12 = pnand %p422_p9, %p416_p7 }
  0x6b   : > { %426 = shalt.err (!%p423_p12)
}
  0x6c   : > { %290 = dma.vmem_to_hbm [thread:$0]  (%p581_p8), %s643_s19, 128, %s648_s27, %s177_s29  }
  0x6d PF: > { %s202_s25 = sand.u32 1, %s457_s9   ;;  %p711_p13 = scmp.ne.s32.totalorder %s697_s16, 0 }
  0x6e   : > { %p712_p0 = scmp.ge.s32.totalorder %s469_s12, 2  ;;  %s203_s23 = scalar_lea.sflag [#allocation4], %s202_s25 }
  0x70   : > { %p301_p5 = pnand %p712_p0, %p711_p13 }
  0x72   : > { %452 = dma.done.wait (!%p301_p5), %s203_s23, 128  }
  0x73   : > { %454 = vsyncadd (!%p301_p5), %s203_s23, 4294967168  ;;  %p16_p10 = scmp.ge.s32.totalorder %s537_s20, 4   ;;  %s713_s9 = smov %s461_s10 }
  0x74   : > { %s714_s10 = smov %s465_s11  ;;  %s715_s11 = smov %s573_s7 }
  0x75   : > { %s716_s12 = smov %s537_s20  ;;  %18 = sbr.rel (!%p16_p10) target bundleno = 6 (0x6), region = 77 }
  0x7c   :  { %208 = vsyncpa [#allocation3], 1 }
  0x7d   :  { %210 = vsyncpa [#allocation3 + $0x1], 1 }
  0x7e   :  { %211 = vsyncpa [#allocation6], 1 }
  0x7f   :  { %212 = vsyncpa [#allocation4], 1 }
  0x80   :  { %214 = vsyncpa [#allocation4 + $0x1], 1 }

// kernel: rfm_forward.1
= control target key start
LH: loop header
LB: loop body
LE: loop exit
PB: predicated region body
PF: predicated region fallthrough
CT: control target
= control target key end

     0   :  { %10 = vsyncpa [#allocation3], 0  ;;  %s617_s0 = inlined_call_operand.hbm [shape: f32[16,128], index: 0, kind: input, shape index: {}]   ;;  %s618_s1 = inlined_call_operand.hbm [shape: bf16[128,128], index: 1, kind: input, shape index: {}]   ;;  %s619_s2 = inlined_call_operand.vmem [shape: f32[1,128], index: 2, kind: input, shape index: {}]   ;;  %s620_s3 = inlined_call_operand.hbm [shape: bf16[128,128], index: 3, kind: input, shape index: {}]   ;;  %s621_s4 = inlined_call_operand.vmem [shape: f32[1,128], index: 4, kind: input, shape index: {}]   ;;  %s622_s5 = inlined_call_operand.hbm [shape: f32[16,128], index: 5, kind: output, shape index: {}]  }
   0x1   :  { %11 = vsyncpa [#allocation6], 0 }
   0x2   :  { %12 = vsyncpa [#allocation4], 0  ;;  %s511_s18 = smov [#allocation5]   ;;  %s417_s22 = scalar_lea.hbm %s618_s1, 1024 }
   0x3   :  { %s30_s19 = sshll.u32 %s511_s18, 4  ;;  %p418_p0 = scmp.ne.s32.totalorder %s618_s1, %s417_s22  ;;  %s31_s19 = int_to_ptr.vmem [resolvable:$true] %s30_s19 }
   0x4   :  { %p421_p1 = scmp.lt.u32.totalorder %s417_s22, %s618_s1 }
   0x6   :  { %p423_p2 = pnand %p421_p1, %p418_p0 }
   0x8   :  { %426 = shalt.err (!%p423_p2)
}
   0x9   :  { %s427_s27 = scalar_lea.vmem %s31_s19, 1024  ;;  %p432_p4 = scmp.lt.s32.totalorder %s31_s19, %s31_s19 }
   0xa   :  { %p428_p3 = scmp.ne.s32.totalorder %s31_s19, %s427_s27  ;;  %p433_p5 = scmp.lt.s32.totalorder %s427_s27, %s427_s27 }
   0xc   :  { %p434_p6 = por %p433_p5, %p432_p4 }
   0xe   :  { %p435_p7 = pnand %p434_p6, %p428_p3 }
  0x10   :  { %438 = shalt.err (!%p435_p7)
}
  0x11   :  { %s512_s28 = smov 64   ;;  %s513_s29 = smov 4  }
  0x12   :  { %36 = dma.hbm_to_vmem [thread:$0]  %s618_s1, 1024, %s31_s19, [#allocation6], %s512_s28, %s512_s28, %s513_s29  }
  0x13   :  { %s514_s7 = smov [#allocation2]   ;;  %s439_s11 = scalar_lea.hbm %s617_s0, 256 }
  0x14   :  { %s18_s8 = sshll.u32 %s514_s7, 4  ;;  %p440_p8 = scmp.ne.s32.totalorder %s617_s0, %s439_s11  ;;  %s19_s8 = int_to_ptr.vmem [resolvable:$true] %s18_s8 }
  0x15   :  { %p443_p9 = scmp.lt.u32.totalorder %s439_s11, %s617_s0 }
  0x17   :  { %p445_p10 = pnand %p443_p9, %p440_p8 }
  0x19   :  { %448 = shalt.err (!%p445_p10)
}
  0x1a   :  { %s449_s16 = scalar_lea.vmem %s19_s8, 256  ;;  %p454_p12 = scmp.lt.s32.totalorder %s19_s8, %s19_s8 }
  0x1b   :  { %p450_p11 = scmp.ne.s32.totalorder %s19_s8, %s449_s16  ;;  %p455_p13 = scmp.lt.s32.totalorder %s449_s16, %s449_s16 }
  0x1d   :  { %p456_p0 = por %p455_p13, %p454_p12 }
  0x1f   :  { %p457_p1 = pnand %p456_p0, %p450_p11 }
  0x21   :  { %460 = shalt.err (!%p457_p1)
}
  0x22   :  { %s515_s1 = smov 128   ;;  %s516_s17 = smov 8  }
  0x23   :  { %24 = dma.hbm_to_vmem [thread:$0]  %s617_s0, 256, %s19_s8, [#allocation3], %s515_s1, %s515_s1, %s516_s17  }
  0x24   :  { %s517_s20 = smov [#allocation7]   ;;  %s461_s24 = scalar_lea.hbm %s620_s3, 1024 }
  0x25   :  { %s44_s21 = sshll.u32 %s517_s20, 4  ;;  %p462_p2 = scmp.ne.s32.totalorder %s620_s3, %s461_s24  ;;  %s45_s21 = int_to_ptr.vmem [resolvable:$true] %s44_s21 }
  0x26   :  { %p465_p3 = scmp.lt.u32.totalorder %s461_s24, %s620_s3 }
  0x28   :  { %p467_p4 = pnand %p465_p3, %p462_p2 }
  0x2a   :  { %470 = shalt.err (!%p467_p4)
}
  0x2b   :  { %s471_s6 = scalar_lea.vmem %s45_s21, 1024  ;;  %p476_p6 = scmp.lt.s32.totalorder %s45_s21, %s45_s21 }
  0x2c   :  { %p472_p5 = scmp.ne.s32.totalorder %s45_s21, %s471_s6  ;;  %p477_p7 = scmp.lt.s32.totalorder %s471_s6, %s471_s6 }
  0x2e   :  { %p478_p8 = por %p477_p7, %p476_p6 }
  0x30   :  { %p479_p9 = pnand %p478_p8, %p472_p5 }
  0x32   :  { %482 = shalt.err (!%p479_p9)
}
  0x33   :  { %50 = dma.hbm_to_vmem [thread:$0]  %s620_s3, 1024, %s45_s21, [#allocation6], %s512_s28, %s512_s28, %s513_s29  }
  0x34   :  { %505 = dma.done.wait [#allocation3], 256  }
  0x35   :  { %506 = vsyncadd [#allocation3], 4294967040 }
  0x36   :  { %507 = dma.done.wait [#allocation6], 2048  }
  0x37   :  { %508 = vsyncadd [#allocation6], 4294965248  ;;  %v518_v0 = vmov 0.0   ;;  %vm519_vm0 = vmmov 0   ;;  %v401_v1 = vld [vmem:[#allocation5] sm:$0xff]   ;;  %v402_v2 = vld [vmem:[#allocation5 + $0x8] sm:$0xff]  }
  0x38   :  { %351 = vmatprep.subr.bf16.mxu0 %v518_v0  ;;  %367 = vmatprep.mubr.msk.bf16.mxu0 %vm519_vm0, %v518_v0  ;;  %v403_v3 = vld [vmem:[#allocation5 + $0x10] sm:$0xff]   ;;  %v409_v4 = vld [vmem:[#allocation7] sm:$0xff]   ;;  %v404_v5 = vld [vmem:[#allocation5 + $0x18] sm:$0xff]   ;;  %s520_s9 = smov [#allocation8]  }
  0x39   :  { %371 = vmatprep.subr.bf16.mxu1 %v518_v0  ;;  %387 = vmatprep.mubr.msk.bf16.mxu1 %vm519_vm0, %v518_v0  ;;  %v410_v6 = vld [vmem:[#allocation7 + $0x8] sm:$0xff]   ;;  %v405_v7 = vld [vmem:[#allocation5 + $0x20] sm:$0xff]   ;;  %v411_v8 = vld [vmem:[#allocation7 + $0x10] sm:$0xff]  }
  0x3a   :  { %352 = vmatpush3.bf16.msra.mxu0 %v401_v1  ;;  %372 = vmatpush3.bf16.msra.mxu1 %v409_v4  ;;  %v406_v9 = vld [vmem:[#allocation5 + $0x28] sm:$0xff]   ;;  %v412_v10 = vld [vmem:[#allocation7 + $0x18] sm:$0xff]   ;;  %v407_v11 = vld [vmem:[#allocation5 + $0x30] sm:$0xff]  }
  0x3b   :  { %353 = vmatprep.subr.bf16.mxu0 %v518_v0  ;;  %373 = vmatprep.subr.bf16.mxu1 %v518_v0  ;;  %v413_v12 = vld [vmem:[#allocation7 + $0x20] sm:$0xff]   ;;  %v408_v13 = vld [vmem:[#allocation5 + $0x38] sm:$0xff]   ;;  %v109_v14 = vld [vmem:[#allocation2] sm:$0xff] }
  0x3c   :  { %v110_v15 = vld [vmem:[#allocation2 + $0x8] sm:$0xff]  ;;  %v414_v16 = vld [vmem:[#allocation7 + $0x28] sm:$0xff]   ;;  %v415_v18 = vld [vmem:[#allocation7 + $0x30] sm:$0xff]  }
  0x3d   :  { %v111_v17 = vpack.c.bf16 %v110_v15, %v109_v14  ;;  %v416_v19 = vld [vmem:[#allocation7 + $0x38] sm:$0xff]   ;;  %v315_v20 = vld [vmem:[%s619_s2] ss:$0 sm:$0xff]  ;;  %s302_s2 = sshll.u32 %s520_s9, 4  ;;  %s303_s2 = int_to_ptr.vmem [resolvable:$true] %s302_s2 }
  0x3e   :  { %354 = vmatpush3.bf16.msra.mxu0 %v402_v2  ;;  %374 = vmatpush3.bf16.msra.mxu1 %v410_v6  ;;  %v316_v30 = vld [vmem:[%s621_s4] ss:$0 sm:$0xff]  ;;  %s483_s10 = scalar_lea.vmem %s303_s2, 256  ;;  %p488_p11 = scmp.lt.s32.totalorder %s303_s2, %s303_s2 }
  0x3f   :  { %355 = vmatprep.subr.bf16.mxu0 %v518_v0  ;;  %375 = vmatprep.subr.bf16.mxu1 %v518_v0  ;;  %p484_p10 = scmp.ne.s32.totalorder %s303_s2, %s483_s10  ;;  %p489_p12 = scmp.lt.s32.totalorder %s483_s10, %s483_s10 }
  0x41   :  { %p490_p13 = por %p489_p12, %p488_p11 }
  0x42   :  { %356 = vmatpush3.bf16.msra.mxu0 %v403_v3  ;;  %376 = vmatpush3.bf16.msra.mxu1 %v411_v8 }
  0x43   :  { %357 = vmatprep.subr.bf16.mxu0 %v518_v0  ;;  %377 = vmatprep.subr.bf16.mxu1 %v518_v0  ;;  %p491_p0 = pnand %p490_p13, %p484_p10 }
  0x46   :  { %358 = vmatpush3.bf16.msra.mxu0 %v404_v5  ;;  %378 = vmatpush3.bf16.msra.mxu1 %v412_v10 }
  0x47   :  { %359 = vmatprep.subr.bf16.mxu0 %v518_v0  ;;  %379 = vmatprep.subr.bf16.mxu1 %v518_v0 }
  0x4a   :  { %360 = vmatpush3.bf16.msra.mxu0 %v405_v7  ;;  %380 = vmatpush3.bf16.msra.mxu1 %v413_v12 }
  0x4b   :  { %361 = vmatprep.subr.bf16.mxu0 %v518_v0  ;;  %381 = vmatprep.subr.bf16.mxu1 %v518_v0 }
  0x4e   :  { %362 = vmatpush3.bf16.msra.mxu0 %v406_v9  ;;  %382 = vmatpush3.bf16.msra.mxu1 %v414_v16 }
  0x4f   :  { %363 = vmatprep.subr.bf16.mxu0 %v518_v0  ;;  %383 = vmatprep.subr.bf16.mxu1 %v518_v0 }
  0x52   :  { %364 = vmatpush3.bf16.msra.mxu0 %v407_v11  ;;  %384 = vmatpush3.bf16.msra.mxu1 %v415_v18 }
  0x53   :  { %365 = vmatprep.subr.bf16.mxu0 %v518_v0  ;;  %385 = vmatprep.subr.bf16.mxu1 %v518_v0 }
  0x56   :  { %366 = vmatpush3.bf16.msra.mxu0 %v408_v13  ;;  %386 = vmatpush3.bf16.msra.mxu1 %v416_v19 }
  0x59   :  { %368 = vmatmul.mubr.bf16.vlgmr.msra.gmra.mrb[0].mxu0 %v111_v17 }
 0x12c   :  { %v194_v21 = vpop.f32.mrb[0].mxu0 }
 0x12d   :  { %v195_v22 = vadd.f32 %v315_v20, %v194_v21  ;;  %v369_v23 = vpop.f32.mrb[1].mxu0 }
 0x12e   :  { %v197_v24 = vpop.f32.mrb[2].mxu0 }
 0x12f   :  { %v198_v25 = vadd.f32 %v315_v20, %v197_v24  ;;  %v370_v26 = vpop.f32.mrb[3].mxu0  ;;  %v201_v27 = vmax.f32 %v195_v22, 0.0 }
 0x131   :  { %v202_v28 = vmax.f32 %v198_v25, 0.0 }
 0x133   :  { %v203_v29 = vpack.c.bf16 %v202_v28, %v201_v27 }
 0x135   :  { %388 = vmatmul.mubr.bf16.vlgmr.msra.gmra.mrb[0].mxu1 %v203_v29 }
 0x208   :  { %v286_v31 = vpop.f32.mrb[0].mxu1 }
 0x209   :  { %v287_v32 = vadd.f32 %v316_v30, %v286_v31  ;;  %v389_v33 = vpop.f32.mrb[1].mxu1 }
 0x20a   :  { %v289_v34 = vpop.f32.mrb[2].mxu1 }
 0x20b   :  { %v293_v35 = vmax.f32 %v287_v32, 0.0  ;;  %v290_v36 = vadd.f32 %v316_v30, %v289_v34  ;;  %v390_v37 = vpop.f32.mrb[3].mxu1 }
 0x20d   :  { %295 = vst [vmem:[#allocation8] sm:$0xff] %v293_v35  ;;  %v294_v38 = vmax.f32 %v290_v36, 0.0 }
 0x20f   :  { %296 = vst [vmem:[#allocation8 + $0x8] sm:$0xff] %v294_v38 }
 0x210   :  { %494 = shalt.err (!%p491_p0)
}
 0x211   :  { %s495_s12 = scalar_lea.hbm %s622_s5, 256 }
 0x212   :  { %p496_p1 = scmp.ne.s32.totalorder %s622_s5, %s495_s12  ;;  %p499_p2 = scmp.lt.u32.totalorder %s495_s12, %s622_s5 }
 0x214   :  { %p501_p3 = pnand %p499_p2, %p496_p1 }
 0x216   :  { %504 = shalt.err (!%p501_p3)
}
 0x217   :  { %308 = dma.vmem_to_hbm [thread:$0]  %s303_s2, 256, %s622_s5, [#allocation4], %s515_s1, %s515_s1, %s516_s17  }
 0x218   :  { %509 = dma.done.wait [#allocation4], 256  }
 0x219   :  { %510 = vsyncadd [#allocation4], 4294967040 }
 0x21a   :  { %312 = vsyncpa [#allocation3], 1 }
 0x21b   :  { %313 = vsyncpa [#allocation6], 1 }
 0x21c   :  { %314 = vsyncpa [#allocation4], 1 }

</bundles_post_ra>
